<compile_context>
chip_gen: v7x
topology: tpu7x:2x2x1
jax: 0.10.0
libtpu: 0.0.40
codegen_flags: <defaults>
</compile_context>

<pallas_src>
import functools
import math

import jax
import jax.numpy as jnp
from jax import lax
from jax.experimental import pallas as pl
from jax.experimental.pallas import tpu as pltpu


def qet_block_kernel(x_ref, w_ref, out_ref, *, D, T, H, VW,
                     R_WV, R_BV, R_W1, R_B1, R_W2, R_B2):
    rows = x_ref.shape[0]            # bb * T rows of this batch block
    bb = rows // T
    x = x_ref[...]                   # (bb*T, D), already flat: no in-kernel fold

    # Extended V projection (one lane-dense MXU pass):
    #   columns [0:D] -> V = x @ wv + bv
    #   column  [D]   -> ang = x @ mean_d(wk) + mean(bk)   (collapsed K path)
    wv_ext = w_ref[R_WV:R_WV + D, :VW]
    bv_ext = w_ref[R_BV:R_BV + 1, :VW]
    v_ext = jnp.dot(x, wv_ext, preferred_element_type=jnp.float32) + bv_ext

    v3 = v_ext[:, :D].reshape(bb, T, D)         # sublane-tile-aligned split (T % 8 == 0)
    ang = v_ext[:, D:D + 1].reshape(bb, T, 1)

    # scores[i, j] = cos(ang_j): query-independent -> one softmax row per
    # sequence.  cos(.) in [-1, 1], so the max-subtraction is unnecessary
    # (exact by softmax shift-invariance, numerically safe); exp stays on EUP.
    e = jnp.exp(jnp.cos(ang))                                # (bb, T, 1)
    w = e * (1.0 / jnp.sum(e, axis=1, keepdims=True))
    # TODO(synk): pl.reciprocal(..., approx=True) would free the VPU divide but
    # is numerics-sensitive vs the 1e-5 allclose check; kept exact.
    ctx = jnp.sum(w * v3, axis=1)                            # (bb, D) attended context

    # MLP on the compact per-sequence context (identical for every token).
    w1 = w_ref[R_W1:R_W1 + D, :H]
    b1 = w_ref[R_B1:R_B1 + 1, :H]
    h = jnp.dot(ctx, w1, preferred_element_type=jnp.float32) + b1
    g = 0.5 * h * (1.0 + lax.erf(h * (1.0 / math.sqrt(2.0))))   # exact GELU (nn.GELU default)
    # TODO(synk): bf16 matmul inputs (f32 accumulate) are a win if D/H scale and
    # the 1e-5 tolerance is relaxed; kept f32 for exactness.

    # Second matmul uses the lane-tiled W2/b2, producing the (bb, T*D) output
    # lane-dense directly: no in-kernel broadcast/relayout, unmasked full stores.
    w2t = w_ref[R_W2:R_W2 + H, :T * D]
    b2t = w_ref[R_B2:R_B2 + 1, :T * D]
    out_ref[...] = jnp.dot(g, w2t, preferred_element_type=jnp.float32) + b2t
    # Dropout(p=0.0) / eval mode -> identity.


def qet_block(x, p, *, batch_blocks=None):
    B, T, D = x.shape
    H = 4 * D
    assert T % 8 == 0, "T must be a sublane multiple for the aligned per-sequence views"

    if batch_blocks is None:
        # Keep grid=(1,) for tiny batches (even on 2-TC v7x): splitting a
        # sub-microsecond kernel just doubles the ~0.35 us per-step overhead.
        batch_blocks = 2 if (B >= 64 and B % 2 == 0 and (B // 2) % 8 == 0) else 1
    assert B % batch_blocks == 0, "batch_blocks must divide B"
    bb = B // batch_blocks
    assert batch_blocks == 1 or bb % 8 == 0, \
        "when splitting the grid, bb must be a multiple of 8 for the lane-dense out block"

    # --- one-time layout plumbing (wrapper-side, constant-foldable under jit) ---
    VW = 128                                   # lane width of the extended V projection
    assert D + 1 <= VW
    SL = max(VW, H, T * D)                     # slab lane width

    def rows8(n):                              # round up to a sublane multiple
        return -(-n // 8) * 8

    R_WV = 0
    R_BV = R_WV + rows8(D)
    R_W1 = R_BV + 8
    R_B1 = R_W1 + rows8(D)
    R_W2 = R_B1 + 8
    R_B2 = R_W2 + rows8(H)
    SLAB_ROWS = R_B2 + 8

    wv_ext = (jnp.zeros((D, VW), jnp.float32)
              .at[:, :D].set(p["wv"])
              .at[:, D].set(jnp.mean(p["wk"], axis=1)))      # collapsed K column
    bv_ext = (jnp.zeros((VW,), jnp.float32)
              .at[:D].set(p["bv"][0])
              .at[D].set(jnp.mean(p["bk"])))
    w2t = jnp.tile(p["w2"], (1, T))                          # (H, T*D) lane-tiled proj
    b2t = jnp.tile(p["b2"], (1, T))                          # (1, T*D)

    slab = jnp.zeros((SLAB_ROWS, SL), jnp.float32)
    slab = slab.at[R_WV:R_WV + D, :VW].set(wv_ext)
    slab = slab.at[R_BV, :VW].set(bv_ext)
    slab = slab.at[R_W1:R_W1 + D, :H].set(p["w1"])
    slab = slab.at[R_B1, :H].set(p["b1"][0])
    slab = slab.at[R_W2:R_W2 + H, :T * D].set(w2t)
    slab = slab.at[R_B2, :T * D].set(b2t[0])

    x2 = x.reshape(B * T, D)                   # free HBM reshape; kernel sees flat rows

    kernel = functools.partial(
        qet_block_kernel, D=D, T=T, H=H, VW=VW,
        R_WV=R_WV, R_BV=R_BV, R_W1=R_W1, R_B1=R_B1, R_W2=R_W2, R_B2=R_B2)

    flops = (2 * B * T * D * VW                # extended V projection
             + 4 * B * T * D                   # softmax weighting + context sum
             + 2 * B * D * H                   # MLP fc (compact, B rows)
             + 2 * B * H * (T * D))            # MLP proj (lane-tiled output)
    transcendentals = 2 * B * T + B * H        # cos + exp + erf
    bytes_accessed = 4 * (2 * B * T * D + SLAB_ROWS * SL)

    out_flat = pl.pallas_call(
        kernel,
        out_shape=jax.ShapeDtypeStruct((B, T * D), jnp.float32),
        grid=(batch_blocks,),
        in_specs=[
            pl.BlockSpec((bb * T, D), lambda b: (b, 0)),      # x rows for this block
            # Grid-constant packed weight slab: one DMA instead of nine.
            # TODO(synk): if T/D ever scale, single-buffer this constant spec
            # (pipeline_mode=pl.Buffered(1)), tile T with an online softmax and
            # re-derive tile sizes against v7x's 64 MiB VMEM.
            pl.BlockSpec((SLAB_ROWS, SL), lambda b: (0, 0)),
        ],
        out_specs=pl.BlockSpec((bb, T * D), lambda b: (b, 0)),  # lane-dense store
        compiler_params=pltpu.CompilerParams(dimension_semantics=("parallel",)),
        cost_estimate=pl.CostEstimate(flops=int(flops),
                                      transcendentals=int(transcendentals),
                                      bytes_accessed=int(bytes_accessed)),
    )(x2, slab)
    return out_flat.reshape(B, T, D)           # free XLA reshape back to (B, T, D)


def qet_block_ref(x, p):
    """Pure-JAX reference with the FULL original math (Q path, full K projection,
    (T,T) scores, bmm) at HIGHEST matmul precision, so the kernel's algebraic
    simplifications are verified with a meaningful f32 comparison on TPU."""
    hp = lax.Precision.HIGHEST
    q = jnp.dot(x, p["wq"], precision=hp) + p["bq"]
    k = jnp.dot(x, p["wk"], precision=hp) + p["bk"]
    v = jnp.dot(x, p["wv"], precision=hp) + p["bv"]
    a = q.mean(axis=-1)   # (B, T)
    b = k.mean(axis=-1)   # (B, T)
    col = (jnp.cos(0.5 * a) ** 2 + jnp.sin(0.5 * a) ** 2)[:, :, None]
    row = (jnp.cos(0.5 * b) ** 2 - jnp.sin(0.5 * b) ** 2)[:, None, :]
    scores = col * row
    w = jax.nn.softmax(scores, axis=-1)
    attn = jnp.einsum("bij,bjd->bid", w, v, precision=hp)
    h = jnp.dot(attn, p["w1"], precision=hp) + p["b1"]
    g = 0.5 * h * (1.0 + lax.erf(h / jnp.sqrt(2.0)))
    return jnp.dot(g, p["w2"], precision=hp) + p["b2"]


def init_params(key, n_embd):
    """Deterministic init mimicking PyTorch nn.Linear default (U[-1/sqrt(fan_in), +])."""
    D, H = n_embd, 4 * n_embd
    keys = jax.random.split(key, 10)

    def lin(kw, kb, fan_in, fan_out):
        bound = 1.0 / math.sqrt(fan_in)
        w = jax.random.uniform(kw, (fan_in, fan_out), jnp.float32, -bound, bound)
        b = jax.random.uniform(kb, (1, fan_out), jnp.float32, -bound, bound)
        return w, b

    wq, bq = lin(keys[0], keys[1], D, D)
    wk, bk = lin(keys[2], keys[3], D, D)
    wv, bv = lin(keys[4], keys[5], D, D)
    w1, b1 = lin(keys[6], keys[7], D, H)
    w2, b2 = lin(keys[8], keys[9], H, D)
    return dict(wq=wq, bq=bq, wk=wk, bk=bk, wv=wv, bv=bv,
                w1=w1, b1=b1, w2=w2, b2=b2)


if __name__ == "__main__":
    # config: n_embd=32, block_size(T)=8, bias=True, dropout=0.0
    B, T, D = 2, 8, 32
    key = jax.random.PRNGKey(0)
    k_x, k_p = jax.random.split(key)
    x = jax.random.normal(k_x, (B, T, D), dtype=jnp.float32)
    params = init_params(k_p, D)

    out = jax.block_until_ready(qet_block(x, params))
    ref = jax.block_until_ready(qet_block_ref(x, params))

    assert out.shape == (B, T, D)
    assert jnp.allclose(out, ref, atol=1e-5, rtol=1e-5), "mismatch vs reference"

    print("KERNEL_OK")
</pallas_src>

<mosaic_0001>
module attributes {stable_mosaic.version = 11 : i64} {
  func.func @qet_block_kernel(%arg0: i32, %arg1: memref<16x32xf32, #tpu.memory_space<vmem>>, %arg2: memref<216x256xf32, #tpu.memory_space<vmem>>, %arg3: memref<2x256xf32, #tpu.memory_space<vmem>>) attributes {dimension_semantics = [#tpu.dimension_semantics<parallel>], iteration_bounds = array<i64: 1>, scalar_prefetch = 0 : i64, scratch_operands = 0 : i64, tpu.core_type = #tpu.core_type<tc>, window_params = [{transform_indices = @transform_0, window_bounds = array<i64: 16, 32>}, {pipeline_mode = #tpu.pipeline_mode<synchronous>, transform_indices = @transform_1, window_bounds = array<i64: 216, 256>}, {transform_indices = @transform_2, window_bounds = array<i64: 2, 256>}]} {
    %c0 = arith.constant 0 : index
    %c0_0 = arith.constant 0 : index
    %0 = vector.load %arg1[%c0, %c0_0] : memref<16x32xf32, #tpu.memory_space<vmem>>, vector<16x32xf32>
    %c0_1 = arith.constant 0 : index
    %c0_2 = arith.constant 0 : index
    %1 = vector.load %arg2[%c0_1, %c0_2] : memref<216x256xf32, #tpu.memory_space<vmem>>, vector<32x128xf32>
    %c32 = arith.constant 32 : index
    %c0_3 = arith.constant 0 : index
    %2 = vector.load %arg2[%c32, %c0_3] : memref<216x256xf32, #tpu.memory_space<vmem>>, vector<1x128xf32>
    %cst = arith.constant dense<0.000000e+00> : vector<16x128xf32>
    %3 = tpu.matmul %0, %1, %cst {dimension_numbers = #tpu.dot_dimension_numbers<[1], [0], [0], [1], [0, 0, 1, 1], [], []>} : vector<16x32xf32>, vector<32x128xf32>, vector<16x128xf32> -> vector<16x128xf32>
    %4 = vector.broadcast %2 : vector<1x128xf32> to vector<16x128xf32>
    %5 = arith.addf %3, %4 : vector<16x128xf32>
    %6 = vector.extract_strided_slice %5 {offsets = [0, 0], sizes = [16, 32], strides = [1, 1]} : vector<16x128xf32> to vector<16x32xf32>
    %7 = vector.shape_cast %6 : vector<16x32xf32> to vector<2x8x32xf32>
    %8 = vector.extract_strided_slice %5 {offsets = [0, 32], sizes = [16, 1], strides = [1, 1]} : vector<16x128xf32> to vector<16x1xf32>
    %9 = vector.shape_cast %8 : vector<16x1xf32> to vector<2x8x1xf32>
    %10 = math.cos %9 : vector<2x8x1xf32>
    %11 = math.exp %10 : vector<2x8x1xf32>
    %cst_4 = arith.constant dense<0.000000e+00> : vector<2x1xf32>
    %12 = vector.multi_reduction <add>, %11, %cst_4 [1] : vector<2x8x1xf32> to vector<2x1xf32>
    %13 = vector.shape_cast %12 : vector<2x1xf32> to vector<2x1x1xf32>
    %cst_5 = arith.constant 1.000000e+00 : f32
    %14 = vector.broadcast %cst_5 : f32 to vector<2x1x1xf32>
    %15 = arith.divf %14, %13 : vector<2x1x1xf32>
    %16 = vector.broadcast %15 : vector<2x1x1xf32> to vector<2x8x1xf32>
    %17 = arith.mulf %11, %16 : vector<2x8x1xf32>
    %18 = vector.broadcast %17 : vector<2x8x1xf32> to vector<2x8x32xf32>
    %19 = arith.mulf %18, %7 : vector<2x8x32xf32>
    %cst_6 = arith.constant dense<0.000000e+00> : vector<2x32xf32>
    %20 = vector.multi_reduction <add>, %19, %cst_6 [1] : vector<2x8x32xf32> to vector<2x32xf32>
    %c40 = arith.constant 40 : index
    %c0_7 = arith.constant 0 : index
    %21 = vector.load %arg2[%c40, %c0_7] : memref<216x256xf32, #tpu.memory_space<vmem>>, vector<32x128xf32>
    %c72 = arith.constant 72 : index
    %c0_8 = arith.constant 0 : index
    %22 = vector.load %arg2[%c72, %c0_8] : memref<216x256xf32, #tpu.memory_space<vmem>>, vector<1x128xf32>
    %cst_9 = arith.constant dense<0.000000e+00> : vector<2x128xf32>
    %23 = tpu.matmul %20, %21, %cst_9 {dimension_numbers = #tpu.dot_dimension_numbers<[1], [0], [0], [1], [0, 0, 1, 1], [], []>} : vector<2x32xf32>, vector<32x128xf32>, vector<2x128xf32> -> vector<2x128xf32>
    %24 = vector.broadcast %22 : vector<1x128xf32> to vector<2x128xf32>
    %25 = arith.addf %23, %24 : vector<2x128xf32>
    %cst_10 = arith.constant 5.000000e-01 : f32
    %26 = vector.broadcast %cst_10 : f32 to vector<2x128xf32>
    %27 = arith.mulf %26, %25 : vector<2x128xf32>
    %cst_11 = arith.constant 0.707106769 : f32
    %28 = vector.broadcast %cst_11 : f32 to vector<2x128xf32>
    %29 = arith.mulf %25, %28 : vector<2x128xf32>
    %30 = math.erf %29 : vector<2x128xf32>
    %cst_12 = arith.constant 1.000000e+00 : f32
    %31 = vector.broadcast %cst_12 : f32 to vector<2x128xf32>
    %32 = arith.addf %31, %30 : vector<2x128xf32>
    %33 = arith.mulf %27, %32 : vector<2x128xf32>
    %c80 = arith.constant 80 : index
    %c0_13 = arith.constant 0 : index
    %34 = vector.load %arg2[%c80, %c0_13] : memref<216x256xf32, #tpu.memory_space<vmem>>, vector<128x256xf32>
    %c208 = arith.constant 208 : index
    %c0_14 = arith.constant 0 : index
    %35 = vector.load %arg2[%c208, %c0_14] : memref<216x256xf32, #tpu.memory_space<vmem>>, vector<1x256xf32>
    %cst_15 = arith.constant dense<0.000000e+00> : vector<2x256xf32>
    %36 = tpu.matmul %33, %34, %cst_15 {dimension_numbers = #tpu.dot_dimension_numbers<[1], [0], [0], [1], [0, 0, 1, 1], [], []>} : vector<2x128xf32>, vector<128x256xf32>, vector<2x256xf32> -> vector<2x256xf32>
    %37 = vector.broadcast %35 : vector<1x256xf32> to vector<2x256xf32>
    %38 = arith.addf %36, %37 : vector<2x256xf32>
    %c0_16 = arith.constant 0 : index
    %c0_17 = arith.constant 0 : index
    %39 = vector.load %arg3[%c0_16, %c0_17] : memref<2x256xf32, #tpu.memory_space<vmem>>, vector<2x256xf32>
    tpu.vector_store %arg3[%c0_16, %c0_17], %38 {strides = array<i32>} : memref<2x256xf32, #tpu.memory_space<vmem>>, vector<2x256xf32>,
    return
  }
  func.func @transform_0(%arg0: i32) -> (i32, i32) {
    %c0_i32 = arith.constant 0 : i32
    %c0_i32_0 = arith.constant 0 : i32
    return %arg0, %c0_i32 : i32, i32
  }
  func.func @transform_1(%arg0: i32) -> (i32, i32) {
    %c0_i32 = arith.constant 0 : i32
    %c0_i32_0 = arith.constant 0 : i32
    %c0_i32_1 = arith.constant 0 : i32
    return %c0_i32, %c0_i32_0 : i32, i32
  }
  func.func @transform_2(%arg0: i32) -> (i32, i32) {
    %c0_i32 = arith.constant 0 : i32
    %c0_i32_0 = arith.constant 0 : i32
    return %arg0, %c0_i32 : i32, i32
  }
}

</mosaic_0001>

<bundles_post_ra>
// kernel: tpu_custom_call.1
= control target key start
LH: loop header
LB: loop body
LE: loop exit
PB: predicated region body
PF: predicated region fallthrough
CT: control target
= control target key end

     0   :  { %7 = vsyncpa [#allocation3], 0  ;;  %s976_s0 = inlined_call_operand.hbm [shape: f32[16,32], index: 0, kind: input, shape index: {}]   ;;  %s977_s1 = inlined_call_operand.hbm [shape: f32[216,256], index: 1, kind: input, shape index: {}]   ;;  %s978_s2 = inlined_call_operand.hbm [shape: f32[2,256], index: 2, kind: output, shape index: {}]  }
   0x1   :  { %8 = vsyncpa [#allocation6], 0 }
   0x2   :  { %9 = vsyncpa [#allocation4], 0  ;;  %s823_s9 = smov [#allocation2]   ;;  %s751_s13 = scalar_lea.hbm %s976_s0, 256 }
   0x3   :  { %s15_s10 = sshll.u32 %s823_s9, 4  ;;  %p752_p0 = scmp.ne.s32.totalorder %s976_s0, %s751_s13  ;;  %s16_s10 = int_to_ptr.vmem [resolvable:$true] %s15_s10 }
   0x4   :  { %p755_p1 = scmp.lt.u32.totalorder %s751_s13, %s976_s0 }
   0x6   :  { %p757_p2 = pnand %p755_p1, %p752_p0 }
   0x8   :  { %760 = shalt.err (!%p757_p2)
}
   0x9   :  { %s761_s18 = scalar_lea.vmem %s16_s10, 256  ;;  %p766_p4 = scmp.lt.s32.totalorder %s16_s10, %s16_s10 }
   0xa   :  { %p762_p3 = scmp.ne.s32.totalorder %s16_s10, %s761_s18  ;;  %p767_p5 = scmp.lt.s32.totalorder %s761_s18, %s761_s18 }
   0xc   :  { %p768_p6 = por %p767_p5, %p766_p4 }
   0xe   :  { %p769_p7 = pnand %p768_p6, %p762_p3 }
  0x10   :  { %772 = shalt.err (!%p769_p7)
}
  0x11   :  { %s824_s19 = smov 128   ;;  %s825_s20 = smov 8  }
  0x12   :  { %21 = dma.hbm_to_vmem [thread:$0]  %s976_s0, 256, %s16_s10, [#allocation3], %s824_s19, %s824_s19, %s825_s20  }
  0x13   :  { %s826_s23 = smov [#allocation5]   ;;  %s773_s27 = scalar_lea.hbm %s977_s1, 6912 }
  0x14   :  { %s27_s24 = sshll.u32 %s826_s23, 4  ;;  %p774_p8 = scmp.ne.s32.totalorder %s977_s1, %s773_s27  ;;  %s28_s24 = int_to_ptr.vmem [resolvable:$true] %s27_s24 }
  0x15   :  { %p777_p9 = scmp.lt.u32.totalorder %s773_s27, %s977_s1 }
  0x17   :  { %p779_p10 = pnand %p777_p9, %p774_p8 }
  0x19   :  { %782 = shalt.err (!%p779_p10)
}
  0x1a   :  { %s783_s4 = scalar_lea.vmem %s28_s24, 6912  ;;  %p788_p12 = scmp.lt.s32.totalorder %s28_s24, %s28_s24 }
  0x1b   :  { %p784_p11 = scmp.ne.s32.totalorder %s28_s24, %s783_s4  ;;  %p789_p13 = scmp.lt.s32.totalorder %s783_s4, %s783_s4 }
  0x1d   :  { %p790_p0 = por %p789_p13, %p788_p12 }
  0x1f   :  { %p791_p1 = pnand %p790_p0, %p784_p11 }
  0x21   :  { %794 = shalt.err (!%p791_p1)
}
  0x22   :  { %s827_s0 = smov 256   ;;  %s828_s5 = smov 16  }
  0x23   :  { %33 = dma.hbm_to_vmem [thread:$0]  %s977_s1, 6912, %s28_s24, [#allocation6], %s827_s0, %s827_s0, %s828_s5  }
  0x24   :  { %817 = dma.done.wait [#allocation3], 256  }
  0x25   :  { %818 = vsyncadd [#allocation3], 4294967040 }
  0x26   :  { %819 = dma.done.wait [#allocation6], 6912  }
  0x27   :  { %820 = vsyncadd [#allocation6], 4294960384  ;;  %vm47_vm0 = vcmask 261120   ;;  %v42_v0 = vld [vmem:[#allocation5] sm:$0xff]  ;;  %v43_v1 = vld [vmem:[#allocation5 + $0x10] sm:$0xff]  ;;  %v829_v8 = vmov 32  }
  0x28   :  { %v44_v2 = vld [vmem:[#allocation5 + $0x20] sm:$0xff]  ;;  %v661_v3 = vpack.c.bf16 %v43_v1, %v42_v0  ;;  %v45_v4 = vld [vmem:[#allocation5 + $0x30] sm:$0xff]  ;;  %v41_v7 = vld [vmem:[#allocation2 + $0x8] sm:$0xff]  ;;  %732 = vset.pattern.permute.xlu0 %v829_v8  ;;  %v830_v34 = vmov 683565275   ;;  %s839_s1 = smov [#allocation7]  }
  0x29   :  { %v40_v5 = vld [vmem:[#allocation2] sm:$0xff]  ;;  %v665_v6 = vpack.c.bf16 %v45_v4, %v44_v2  ;;  %v46_v9 = vld [vmem:[#allocation5 + $0x40] ss:$0 sm:$0xff]  ;;  %v831_v38 = vmov 2475754826   ;;  %s606_s8 = sshll.u32 %s839_s1, 4  ;;  %s607_s8 = int_to_ptr.vmem [resolvable:$true] %s606_s8 }
  0x2a   :  { %647 = vmatprep.mubr.msk.f32.mxu1 %vm47_vm0, %v40_v5  ;;  %662 = vmatprep.subr.bf16.mxu1 %v661_v3  ;;  %v832_v40 = vmov 2131351028   ;;  %v833_v42 = vmov 2102212464   ;;  %v834_v44 = vmov 920167782   ;;  %p800_p3 = scmp.lt.s32.totalorder %s607_s8, %s607_s8 }
  0x2b   :  { %664 = vmatpush3.bf16.msra.mxu1 %v661_v3  ;;  %v835_v51 = vmov 1326507024   ;;  %s795_s9 = scalar_lea.vmem %s607_s8, 64 }
  0x2c   :  { %666 = vmatprep.subr.bf16.mxu1 %v665_v6  ;;  %p796_p2 = scmp.ne.s32.totalorder %s607_s8, %s795_s9  ;;  %p801_p4 = scmp.lt.s32.totalorder %s795_s9, %s795_s9 }
  0x2e   :  { %p802_p5 = por %p801_p4, %p800_p3 }
  0x2f   :  { %668 = vmatpush3.bf16.msra.mxu1 %v665_v6 }
  0x30   :  { %p803_p6 = pnand %p802_p5, %p796_p2 }
  0x32   :  { %648 = vmatmul.mubr.msk.f32.vlgmr.msra.gmra.mrb[0].mxu1 %vm47_vm0, %v41_v7 }
 0x105   :  { %v649_v10 = vpop.f32.mrb[0].mxu1 }
 0x106   :  { %v881_v11 = vadd.f32 %v649_v10, %v46_v9  ;;  %v120_v12 = vpop.f32.mrb[1].mxu1 }
 0x107   :  { %v883_v13 = vadd.f32 %v120_v12, %v46_v9 }
 0x108   :  { %v232_v14 = vand.u32 2147483647, %v881_v11  ;;  %v235_v15 = vand.u32 2139095040, %v881_v11  ;;  %vm234_vm15 = vcmp.lt.s32.totalorder %v881_v11, 0 }
 0x109   :  { %v132_v16 = vand.u32 2139095040, %v883_v13  ;;  %v129_v19 = vand.u32 2147483647, %v883_v13 }
 0x10a   :  { %v236_v17 = vshrl.u32 %v235_v15, 23  ;;  %v239_v18 = vand.u32 8388607, %v232_v14 }
 0x10b   :  { %v133_v20 = vshrl.u32 %v132_v16, 23  ;;  %v893_v25 = vand.u32 8388607, %v129_v19 }
 0x10c   :  { %v622_v21 = vadd.s32 4294967169, %v236_v17  ;;  %v240_v24 = vor.u32 8388608, %v239_v18 }
 0x10d   :  { %v618_v22 = vadd.s32 4294967169, %v133_v20  ;;  %v137_v32 = vor.u32 8388608, %v893_v25 }
 0x10e   :  { %v242_v23 = vadd.s32 1, %v622_v21  ;;  %v895_v31 = vshll.u32 %v240_v24, 8 }
 0x10f   :  { %v139_v26 = vadd.s32 1, %v618_v22 }
 0x110   :  { %vm243_vm1 = vcmp.gt.s32.totalorder %v242_v23, 0 }
 0x111   :  { %v244_v27 = vsel %vm243_vm1, %v242_v23, 0  ;;  %vm140_vm2 = vcmp.gt.s32.totalorder %v139_v26, 0  ;;  %vm936_vm1 = vcmp.le.f32.partialorder %v232_v14, 0.7853982 }
 0x112   :  { %v245_v28 = vshrl.u32 %v244_v27, 5  ;;  %v246_v29 = vand.u32 31, %v244_v27  ;;  %v141_v30 = vsel %vm140_vm2, %v139_v26, 0  ;;  %v177_v26 = vshll.u32 %v137_v32, 8 }
 0x113   :  { %v898_v36 = vshrl.u32 %v141_v30, 5  ;;  %v143_v37 = vand.u32 31, %v141_v30  ;;  %vm131_vm2 = vcmp.lt.s32.totalorder %v883_v13, 0 }
 0x114   :  { %v247_v33 = vsub.s32 32, %v246_v29  ;;  %v249_v35 = vshll.u32 %v830_v34, %v246_v29  ;;  %v252_v39 = vshll.u32 %v831_v38, %v246_v29  ;;  %v255_v41 = vshll.u32 %v832_v40, %v246_v29 }
 0x115   :  { %v258_v43 = vshll.u32 %v833_v42, %v246_v29  ;;  %v261_v45 = vshll.u32 %v834_v44, %v246_v29  ;;  %vm264_vm3 = vcmp.lt.s32.totalorder %v245_v28, 1  ;;  %vm265_vm4 = vcmp.lt.s32.totalorder %v245_v28, 2 }
 0x116   :  { %v250_v46 = vshrl.u32 %v831_v38, %v247_v33  ;;  %v253_v47 = vshrl.u32 %v832_v40, %v247_v33  ;;  %v256_v48 = vshrl.u32 %v833_v42, %v247_v33  ;;  %v248_v49 = vshrl.u32 %v830_v34, %v247_v33 }
 0x117   :  { %v259_v50 = vshrl.u32 %v834_v44, %v247_v33  ;;  %v262_v52 = vshrl.u32 %v835_v51, %v247_v33  ;;  %v144_v56 = vsub.s32 32, %v143_v37  ;;  %vm266_vm5 = vcmp.lt.s32.totalorder %v245_v28, 3 }
 0x118   :  { %v251_v53 = vor.u32 %v250_v46, %v249_v35  ;;  %v254_v54 = vor.u32 %v253_v47, %v252_v39  ;;  %v257_v55 = vor.u32 %v256_v48, %v255_v41  ;;  %vm267_vm6 = vcmp.lt.s32.totalorder %v245_v28, 4 }
 0x119   :  { %v260_v57 = vor.u32 %v259_v50, %v258_v43  ;;  %v263_v58 = vor.u32 %v262_v52, %v261_v45  ;;  %v146_v2 = vshll.u32 %v830_v34, %v143_v37  ;;  %v147_v5 = vshrl.u32 %v831_v38, %v144_v56 }
 0x11a   :  { %v268_v59 = vsel %vm264_vm3, %v248_v49, %v251_v53  ;;  %v269_v60 = vsel %vm267_vm6, %v257_v55, 2102212464  ;;  %v272_v61 = vsel %vm264_vm3, %v251_v53, %v254_v54  ;;  %v276_v62 = vsel %vm264_vm3, %v254_v54, %v257_v55 }
 0x11b   :  { %v270_v63 = vsel %vm266_vm5, %v254_v54, %v269_v60  ;;  %v273_v0 = vsel %vm267_vm6, %v260_v57, 920167782  ;;  %v277_v1 = vsel %vm267_vm6, %v263_v58, 1326507024  ;;  %v149_v6 = vshll.u32 %v831_v38, %v143_v37 }
 0x11c   :  { %v274_v3 = vsel %vm266_vm5, %v257_v55, %v273_v0  ;;  %v278_v4 = vsel %vm266_vm5, %v260_v57, %v277_v1  ;;  %v271_v7 = vsel %vm265_vm4, %v268_v59, %v270_v63  ;;  %v150_v10 = vshrl.u32 %v832_v40, %v144_v56 }
 0x11d   :  { %v275_v8 = vsel %vm265_vm4, %v272_v61, %v274_v3  ;;  %v279_v9 = vsel %vm265_vm4, %v276_v62, %v278_v4  ;;  %v148_v18 = vor.u32 %v147_v5, %v146_v2  ;;  %v152_v21 = vshll.u32 %v832_v40, %v143_v37 }
 0x11e   :  { %v907_v12 = vmul.u32.u64.low %v895_v31, %v279_v9  ;;  %v908_v15 = vmul.u32.u64.high %v895_v31, %v279_v9, %v907_v12  ;;  %v911_v16 = vmul.u32.u64.low %v895_v31, %v275_v8  ;;  %v912_v17 = vmul.u32.u64.high %v895_v31, %v275_v8, %v911_v16 }
 0x11f   :  { %v151_v20 = vor.u32 %v150_v10, %v149_v6  ;;  %v153_v22 = vshrl.u32 %v833_v42, %v144_v56  ;;  %v155_v23 = vshll.u32 %v833_v42, %v143_v37  ;;  %v156_v24 = vshrl.u32 %v834_v44, %v144_v56 }
 0x120   :  { %v159_v25 = vshrl.u32 %v835_v51, %v144_v56  ;;  %v287_v27 = vmul.u32 %v895_v31, %v271_v7  ;;  %v145_v28 = vshrl.u32 %v830_v34, %v144_v56  ;;  %v158_v30 = vshll.u32 %v834_v44, %v143_v37 }
 0x121   :  { %v154_v29 = vor.u32 %v153_v22, %v152_v21  ;;  %vm289_vm7 = vc.u32 %v908_v15, %v911_v16  ;;  %v290_v33 = vadd.s32 1, %v912_v17  ;;  %v157_v35 = vor.u32 %v156_v24, %v155_v23 }
 0x122   :  { %vm161_vm8 = vcmp.lt.s32.totalorder %v898_v36, 1  ;;  %v160_v38 = vor.u32 %v159_v25, %v158_v30  ;;  %vm163_vm9 = vcmp.lt.s32.totalorder %v898_v36, 3  ;;  %vm164_vm10 = vcmp.lt.s32.totalorder %v898_v36, 4 }
 0x123   :  { %v169_v39 = vsel %vm161_vm8, %v148_v18, %v151_v20  ;;  %v291_v32 = vsel %vm289_vm7, %v290_v33, %v912_v17  ;;  %v166_v40 = vsel %vm164_vm10, %v154_v29, 2102212464  ;;  %v170_v31 = vsel %vm164_vm10, %v157_v35, 920167782 }
 0x124   :  { %v173_v34 = vsel %vm161_vm8, %v151_v20, %v154_v29  ;;  %v292_v41 = vadd.s32 %v291_v32, %v287_v27  ;;  %vm162_vm11 = vcmp.lt.s32.totalorder %v898_v36, 2  ;;  %v171_v37 = vsel %vm163_vm9, %v154_v29, %v170_v31  ;;  %v389_v32 = vld [vmem:[#allocation5 + $0x80] sm:$0xff] }
 0x125   :  { %v174_v42 = vsel %vm164_vm10, %v160_v38, 1326507024  ;;  %v165_v43 = vsel %vm161_vm8, %v145_v28, %v148_v18  ;;  %v167_v44 = vsel %vm163_vm9, %v151_v20, %v166_v40  ;;  %v172_v45 = vsel %vm162_vm11, %v169_v39, %v171_v37 }
 0x126   :  { %v175_v46 = vsel %vm163_vm9, %v157_v35, %v174_v42  ;;  %v293_v47 = vadd.s32 536870912, %v292_v41  ;;  %v922_v49 = vmul.u32.u64.low %v177_v26, %v172_v45  ;;  %v923_v50 = vmul.u32.u64.high %v177_v26, %v172_v45, %v922_v49 }
 0x127   :  { %v176_v48 = vsel %vm162_vm11, %v173_v34, %v175_v46  ;;  %v168_v54 = vsel %vm162_vm11, %v165_v43, %v167_v44  ;;  %v288_v6 = vadd.s32 %v911_v16, %v908_v15  ;;  %vm948_vm3 = vcmp.le.f32.partialorder %v129_v19, 0.7853982 }
 0x128   :  { %v925_v51 = vmul.u32.u64.low %v177_v26, %v176_v48  ;;  %v926_v52 = vmul.u32.u64.high %v177_v26, %v176_v48, %v925_v51  ;;  %v294_v53 = vshrl.u32 %v293_v47, 30  ;;  %v187_v56 = vadd.s32 1, %v923_v50 }
 0x129   :  { %v184_v36 = vmul.u32 %v177_v26, %v168_v54  ;;  %vm324_vm7 = vweird.f32 %v881_v11  ;;  %vm221_vm11 = vweird.f32 %v883_v13 }
 0x12a   :  { %v295_v55 = vshll.u32 %v294_v53, 30  ;;  %vm186_vm12 = vc.u32 %v926_v52, %v922_v49  ;;  %v185_v27 = vadd.s32 %v922_v49, %v926_v52  ;;  %v318_v31 = vsub.s32 4, %v294_v53 }
 0x12b   :  { %v188_v58 = vsel %vm186_vm12, %v187_v56, %v923_v50  ;;  %vm339_vm12 = vcmask 269568  }
 0x12c   :  { %v296_v57 = vsub.s32 %v292_v41, %v295_v55  ;;  %v189_v59 = vadd.s32 %v188_v58, %v184_v36  ;;  %v319_v43 = vsel %vm234_vm15, %v318_v31, %v294_v53  ;;  %v838_v31 = vmov 0.0  }
 0x12d   :  { %v321_v45 = vsel %vm936_vm1, 0, %v319_v43  ;;  %581 = vmatprep.mubr.f32.mxu0 %v838_v31  ;;  %v474_v43 = vld [vmem:[#allocation5 + $0xb0] sm:$0xff] }
 0x12e   :  { %v298_v60 = vsub.s32 0, %v296_v57  ;;  %v190_v61 = vadd.s32 536870912, %v189_v59  ;;  %v325_v49 = vand.u32 3, %v321_v45  ;;  %v479_v45 = vld [vmem:[#allocation5 + $0xd8] sm:$0xff] }
 0x130   :  { %v623_v62 = vmin.u32 %v298_v60, %v296_v57  ;;  %v191_v63 = vshrl.u32 %v190_v61, 30  ;;  %vm330_vm4 = vcmp.eq.s32.totalorder %v325_v49, 2  ;;  %vm327_vm5 = vcmp.eq.s32.totalorder %v325_v49, 0 }
 0x131   :  { %vm326_vm6 = vcmp.lt.s32.totalorder %v325_v49, 2  ;;  %v481_v49 = vld [vmem:[#allocation5 + $0xe8] sm:$0xff] }
 0x132   :  { %v300_v0 = vclz %v623_v62  ;;  %v192_v1 = vshll.u32 %v191_v63, 30  ;;  %v215_v48 = vsub.s32 4, %v191_v63 }
 0x134   :  { %v624_v2 = vadd.s32 4294967294, %v300_v0  ;;  %v193_v3 = vsub.s32 %v189_v59, %v192_v1  ;;  %v216_v53 = vsel %vm131_vm2, %v215_v48, %v191_v63  ;;  %v478_v48 = vld [vmem:[#allocation5 + $0xd0] sm:$0xff] }
 0x135   :  { %v218_v56 = vsel %vm948_vm3, 0, %v216_v53  ;;  %v480_v53 = vld [vmem:[#allocation5 + $0xe0] sm:$0xff] }
 0x136   :  { %vm625_vm13 = vcmp.lt.s32.totalorder %v624_v2, 0  ;;  %v195_v5 = vsub.s32 0, %v193_v3  ;;  %v222_v59 = vand.u32 3, %v218_v56 }
 0x137   :  { %v303_v4 = vsel %vm625_vm13, 0, %v624_v2  ;;  %vm837_vm13 = vmmov 0  }
 0x138   :  { %v304_v7 = vsub.s32 32, %v303_v4  ;;  %v308_v8 = vsub.s32 4294967266, %v303_v4  ;;  %v619_v9 = vmin.u32 %v195_v5, %v193_v3  ;;  %v305_v10 = vshll.u32 %v296_v57, %v303_v4  ;;  %658 = vmatprep.mubr.msk.f32.mxu1 %vm837_vm13, %v838_v31  ;;  %v500_v31 = vld [vmem:[#allocation5 + $0x180] sm:$0xff] }
 0x139   :  { %vm227_vm8 = vcmp.eq.s32.totalorder %v222_v59, 2  ;;  %vm224_vm9 = vcmp.eq.s32.totalorder %v222_v59, 0  ;;  %vm223_vm10 = vcmp.lt.s32.totalorder %v222_v59, 2 }
 0x13a   :  { %v306_v12 = vshrl.u32 %v288_v6, %v304_v7  ;;  %v309_v17 = vadd.s32 127, %v308_v8  ;;  %v197_v18 = vclz %v619_v9 }
 0x13c   :  { %v307_v20 = vor.u32 %v306_v12, %v305_v10  ;;  %v310_v21 = vshll.u32 %v309_v17, 23  ;;  %v620_v22 = vadd.s32 4294967294, %v197_v18 }
 0x13e   :  { %v311_v23 = vor.u32 4788187, %v310_v21  ;;  %vm621_vm14 = vcmp.lt.s32.totalorder %v620_v22, 0  ;;  %v314_v25 = vcvt.s32.f32 %v307_v20 }
 0x13f   :  { %v200_v26 = vsel %vm621_vm14, 0, %v620_v22  ;;  %vm393_vm14 = vcmask 1041409  }
 0x140   :  { %v312_v24 = vand.u32 2147483647, %v311_v23  ;;  %v201_v28 = vsub.s32 32, %v200_v26  ;;  %v205_v29 = vsub.s32 4294967266, %v200_v26  ;;  %v202_v16 = vshll.u32 %v193_v3, %v200_v26 }
 0x142   :  { %v315_v15 = vmul.f32 %v314_v25, %v312_v24  ;;  %v203_v30 = vshrl.u32 %v185_v27, %v201_v28  ;;  %v206_v33 = vadd.s32 127, %v205_v29 }
 0x144   :  { %v316_v35 = vxor.u32 2147483648, %v315_v15  ;;  %v204_v38 = vor.u32 %v203_v30, %v202_v16  ;;  %v207_v39 = vshll.u32 %v206_v33, 23  ;;  %v386_v30 = vld [vmem:[#allocation5 + $0x50] sm:$0xff]  ;;  %v387_v33 = vld [vmem:[#allocation5 + $0x60] sm:$0xff] }
 0x146   :  { %v317_v40 = vsel %vm234_vm15, %v316_v35, %v315_v15  ;;  %v208_v41 = vor.u32 4788187, %v207_v39  ;;  %v211_v42 = vcvt.s32.f32 %v204_v38  ;;  %v670_v35 = vpack.c.bf16 %v387_v33, %v386_v30  ;;  %v388_v39 = vld [vmem:[#allocation5 + $0x70] sm:$0xff]  ;;  %v499_v30 = vld [vmem:[#allocation5 + $0x178] sm:$0xff] }
 0x147   :  { %v320_v34 = vsel %vm936_vm1, %v881_v11, %v317_v40  ;;  %v836_v38 = vmov 0.0|0.0   ;;  %v673_v40 = vpack.c.bf16 %v389_v32, %v388_v39  ;;  %v501_v32 = vld [vmem:[#allocation5 + $0x188] sm:$0xff] }
 0x148   :  { %733 = vcosq.f32 %v320_v34  ;;  %v209_v37 = vand.u32 2147483647, %v208_v41  ;;  %669 = vmatprep.subr.bf16.mxu1 %v836_v38  ;;  %v475_v41 = vld [vmem:[#allocation5 + $0xb8] sm:$0xff] }
 0x149   :  { %735 = vsinq.f32 %v320_v34  ;;  %671 = vmatpush3.bf16.msra.mxu1 %v670_v35  ;;  %v473_v34 = vld [vmem:[#allocation5 + $0xa8] sm:$0xff]  ;;  %v496_v35 = vld [vmem:[#allocation5 + $0x160] sm:$0xff] }
 0x14a   :  { %v212_v44 = vmul.f32 %v211_v42, %v209_v37  ;;  %672 = vmatprep.subr.bf16.mxu1 %v836_v38  ;;  %v472_v37 = vld [vmem:[#allocation5 + $0xa0] sm:$0xff]  ;;  %v675_v42 = vpack.c.bf16 %v475_v41, %v473_v34  ;;  %v498_v38 = vld [vmem:[#allocation5 + $0x170] sm:$0xff] }
 0x14b   :  { %v701_v39 = vpack.c.bf16 %v498_v38, %v496_v35  ;;  %v502_v41 = vld [vmem:[#allocation5 + $0x190] sm:$0xff] }
 0x14c   :  { %v213_v14 = vxor.u32 2147483648, %v212_v44  ;;  %676 = vmatprep.subr.bf16.mxu0 %v675_v42  ;;  %v390_v42 = vld [vmem:[#allocation5 + $0x90] ss:$0 sm:$0xff] }
 0x14d   :  { %674 = vmatpush3.bf16.msra.mxu1 %v673_v40  ;;  %v503_v40 = vld [vmem:[#allocation5 + $0x198] sm:$0xff] }
 0x14e   :  { %v214_v47 = vsel %vm131_vm2, %v213_v14, %v212_v44  ;;  %v477_v44 = vld [vmem:[#allocation5 + $0xc8] sm:$0xff]  ;;  %v677_v14 = vpack.c.bf16 %v474_v43, %v472_v37  ;;  %v703_v34 = vpack.c.bf16 %v503_v40, %v501_v32  ;;  %v705_v37 = vpack.c.bf16 %v502_v41, %v500_v31 }
 0x14f   :  { %v217_v50 = vsel %vm948_vm3, %v883_v13, %v214_v47  ;;  %v679_v46 = vpack.c.bf16 %v479_v45, %v477_v44  ;;  %v476_v47 = vld [vmem:[#allocation5 + $0xc0] sm:$0xff] }
 0x150   :  { %737 = vcosq.f32 %v217_v50  ;;  %678 = vmatpush1.bf16.msra.mxu0 %v677_v14 }
 0x151   :  { %739 = vsinq.f32 %v217_v50  ;;  %v483_v50 = vld [vmem:[#allocation5 + $0xf8] sm:$0xff]  ;;  %680 = vmatprep.subr.bf16.mxu0 %v679_v46 }
 0x152   :  { %v734_v51 = vpop.eup %733 }
 0x153   :  { %v736_v52 = vpop.eup %735  ;;  %v331_v54 = vxor.u32 2147483648, %v734_v51 }
 0x154   :  { %v328_v55 = vxor.u32 2147483648, %v736_v52 }
 0x155   :  { %v332_v19 = vsel %vm330_vm4, %v331_v54, %v736_v52  ;;  %v683_v52 = vpack.c.bf16 %v483_v50, %v481_v49  ;;  %v482_v54 = vld [vmem:[#allocation5 + $0xf0] sm:$0xff]  ;;  %v507_v50 = vlaneseq }
 0x156   :  { %v329_v36 = vsel %vm327_vm5, %v734_v51, %v328_v55  ;;  %v681_v51 = vpack.c.bf16 %v478_v48, %v476_v47  ;;  %v685_v55 = vpack.c.bf16 %v482_v54, %v480_v53  ;;  %v505_v53 = vld [vmem:[#allocation5 + $0x1a0] ss:$8 sm:$0x3] }
 0x157   :  { %v333_v57 = vsel %vm326_vm6, %v329_v36, %v332_v19 }
 0x158   :  { %v334_v58 = vsel %vm324_vm7, nan, %v333_v57  ;;  %682 = vmatpush1.bf16.msra.mxu0 %v681_v51  ;;  %v508_v51 = vshrl.u32 %v507_v50, 7 }
 0x159   :  { %v337_v60 = vmul.f32 1.442695, %v334_v58  ;;  %684 = vmatprep.subr.bf16.mxu0 %v683_v52 }
 0x15a   :  { %v738_v61 = vpop.eup %737  ;;  %v509_v52 = vsub.s32 0, %v508_v51  ;;  %v513_v54 = vsub.s32 1, %v508_v51 }
 0x15b   :  { %741 = vpow2.f32 %v337_v60  ;;  %v740_v62 = vpop.eup %739  ;;  %v228_v63 = vxor.u32 2147483648, %v738_v61 }
 0x15c   :  { %v225_v0 = vxor.u32 2147483648, %v740_v62  ;;  %686 = vmatpush1.bf16.msra.mxu0 %v685_v55  ;;  %v510_v55 = vrot.slane %v505_v53, %v509_v52 }
 0x15d   :  { %v229_v1 = vsel %vm227_vm8, %v228_v63, %v740_v62 }
 0x15e   :  { %v226_v2 = vsel %vm224_vm9, %v738_v61, %v225_v0 }
 0x15f   :  { %v230_v3 = vsel %vm223_vm10, %v226_v2, %v229_v1 }
 0x160   :  { %v231_v4 = vsel %vm221_vm11, nan, %v230_v3 }
 0x161   :  { %v335_v5 = vmul.f32 1.442695, %v231_v4 }
 0x163   :  { %743 = vpow2.f32 %v335_v5 }
 0x165   :  { %v742_v6 = vpop.eup %741 }
 0x166   :  { %v347_v7 = vsel %vm339_vm12, %v742_v6, 0.0 }
 0x167   :  { %v348_v8 = vrot.slane %v347_v7, 4 }
 0x169   :  { %v349_v9 = vadd.f32 %v348_v8, %v347_v7  ;;  %v485_v8 = vld [vmem:[#allocation5 + $0x108] sm:$0xff] }
 0x16b   :  { %v350_v12 = vrot.slane %v349_v9, 2 }
 0x16d   :  { %v744_v10 = vpop.eup %743  ;;  %v351_v21 = vadd.f32 %v350_v12, %v349_v9  ;;  %v487_v9 = vld [vmem:[#allocation5 + $0x118] sm:$0xff]  ;;  %v486_v12 = vld [vmem:[#allocation5 + $0x110] sm:$0xff] }
 0x16e   :  { %v340_v17 = vsel %vm339_vm12, %v744_v10, 0.0 }
 0x16f   :  { %v341_v18 = vrot.slane %v340_v17, 4  ;;  %v352_v24 = vrot.slane %v351_v21, 1 }
 0x171   :  { %v342_v20 = vadd.f32 %v341_v18, %v340_v17  ;;  %v353_v27 = vadd.f32 %v352_v24, %v351_v21  ;;  %v489_v18 = vld [vmem:[#allocation5 + $0x128] sm:$0xff] }
 0x173   :  { %v343_v22 = vrot.slane %v342_v20, 2 }
 0x175   :  { %v344_v23 = vadd.f32 %v343_v22, %v342_v20  ;;  %v491_v20 = vld [vmem:[#allocation5 + $0x138] sm:$0xff]  ;;  %v488_v22 = vld [vmem:[#allocation5 + $0x120] sm:$0xff] }
 0x176   :  { %v691_v21 = vpack.c.bf16 %v491_v20, %v489_v18 }
 0x177   :  { %v345_v25 = vrot.slane %v344_v23, 1 }
 0x179   :  { %v346_v26 = vadd.f32 %v345_v25, %v344_v23  ;;  %v490_v23 = vld [vmem:[#allocation5 + $0x130] sm:$0xff]  ;;  %v493_v25 = vld [vmem:[#allocation5 + $0x148] sm:$0xff] }
 0x17a   :  { %v693_v24 = vpack.c.bf16 %v490_v23, %v488_v22 }
 0x17b   :  { %745 = vrcp.f32 %v346_v26  ;;  %v495_v26 = vld [vmem:[#allocation5 + $0x158] sm:$0xff] }
 0x17c   :  { %747 = vrcp.f32 %v353_v27  ;;  %v695_v27 = vpack.c.bf16 %v495_v26, %v493_v25 }
 0x185   :  { %v746_v28 = vpop.eup %745 }
 0x186   :  { %v358_v29 = vmul.f32 %v746_v28, %v744_v10  ;;  %v748_v15 = vpop.eup %747  ;;  %v484_v10 = vld [vmem:[#allocation5 + $0x100] sm:$0xff] }
 0x187   :  { %v359_v16 = vmul.f32 %v748_v15, %v742_v6  ;;  %v689_v17 = vpack.c.bf16 %v486_v12, %v484_v10  ;;  %v492_v28 = vld [vmem:[#allocation5 + $0x140] sm:$0xff] }
 0x188   :  { %362 = vperm.xlu0 %732, %v358_v29   ;;  %v494_v29 = vld [vmem:[#allocation5 + $0x150] sm:$0xff] }
 0x189   :  { %v697_v15 = vpack.c.bf16 %v494_v29, %v492_v28 }
 0x18c   :  { %367 = vperm.xlu0 %732, %v359_v16   ;;  %v497_v16 = vld [vmem:[#allocation5 + $0x168] sm:$0xff] }
 0x18d   :  { %v699_v33 = vpack.c.bf16 %v499_v30, %v497_v16 }
 0x207   :  { %v363_v19 = vpop.permute.xlu0 %362 }
 0x208   :  { %v370_v56 = vmul.f32 %v363_v19, %v883_v13  ;;  %v514_v19 = vrot.slane %v505_v53, %v513_v54 }
 0x20a   :  { %v372_v36 = vsel %vm47_vm0, %v370_v56, 0.0 }
 0x20b   :  { %v373_v57 = vrot.slane %v372_v36, 4  ;;  %v368_v58 = vpop.permute.xlu0 %367 }
 0x20c   :  { %v371_v59 = vmul.f32 %v368_v58, %v881_v11  ;;  %v687_v11 = vpack.c.bf16 %v487_v9, %v485_v8 }
 0x20d   :  { %v374_v60 = vadd.f32 %v373_v57, %v372_v36 }
 0x20e   :  { %v379_v61 = vsel %vm47_vm0, %v371_v59, 0.0  ;;  %688 = vmatprep.subr.bf16.mxu0 %v687_v11 }
 0x20f   :  { %v375_v62 = vrot.slane %v374_v60, 2  ;;  %v380_v63 = vrot.slane %v379_v61, 4  ;;  %690 = vmatpush1.bf16.msra.mxu0 %v689_v17 }
 0x210   :  { %692 = vmatprep.subr.bf16.mxu0 %v691_v21 }
 0x211   :  { %v376_v0 = vadd.f32 %v375_v62, %v374_v60  ;;  %v381_v1 = vadd.f32 %v380_v63, %v379_v61 }
 0x213   :  { %v382_v2 = vrot.slane %v381_v1, 2  ;;  %v377_v3 = vrot.slane %v376_v0, 1  ;;  %694 = vmatpush1.bf16.msra.mxu0 %v693_v24 }
 0x214   :  { %696 = vmatprep.subr.bf16.mxu0 %v695_v27 }
 0x215   :  { %v383_v4 = vadd.f32 %v382_v2, %v381_v1  ;;  %v378_v6 = vadd.f32 %v377_v3, %v376_v0 }
 0x217   :  { %v384_v5 = vrot.slane %v383_v4, 1  ;;  %698 = vmatpush1.bf16.msra.mxu0 %v697_v15 }
 0x218   :  { %700 = vmatprep.subr.bf16.mxu0 %v699_v33 }
 0x219   :  { %v385_v13 = vadd.f32 %v384_v5, %v383_v4 }
 0x21b   :  { %v394_v7 = vsel %vm393_vm14, %v385_v13, %v378_v6  ;;  %702 = vmatpush1.bf16.msra.mxu0 %v701_v39 }
 0x21c   :  { %659 = vmatmul.mubr.msk.f32.vlgmr.msra.gmra.mrb[2].mxu1 %vm47_vm0, %v394_v7  ;;  %704 = vmatprep.subr.bf16.mxu0 %v703_v34 }
 0x21f   :  { %706 = vmatpush1.bf16.msra.mxu0 %v705_v37 }
 0x2ef   :  { %v463_v43 = vpop.f32.mrb[2].mxu1 }
 0x2f0   :  { %v464_v44 = vadd.f32 %v463_v43, %v390_v42  ;;  %v660_v45 = vpop.f32.mrb[3].mxu1 }
 0x2f2   :  { %v468_v14 = vmul.f32 0.70710677, %v464_v44  ;;  %v467_v47 = vmul.f32 0.5, %v464_v44 }
 0x2f4   :  { %749 = verf.f32 %v468_v14 }
 0x2fe   :  { %v750_v46 = vpop.eup %749 }
 0x2ff   :  { %v470_v48 = vadd.f32 1.0, %v750_v46 }
 0x301   :  { %v471_v49 = vmul.f32 %v470_v48, %v467_v47 }
 0x303   :  { %582 = vmatmul.mubr.f32.vlgmr.msra.gmra.mrb[0].mxu0 %v471_v49 }
 0x3d6   :  { %v583_v56 = vpop.f32.mrb[0].mxu0 }
 0x3d7   :  { %v584_v36 = vadd.f32 %v583_v56, %v510_v55  ;;  %v585_v57 = vpop.f32.mrb[1].mxu0 }
 0x3d8   :  { %v586_v58 = vadd.f32 %v585_v57, %v514_v19 }
 0x3da   :  { %v590_v59 = vcombine.low %v584_v36, %v586_v58 }
 0x3dc   :  { %627 = vst.sshfl [vmem:[#allocation7] sm:$0x33 pattern:$0x76325410] %v590_v59 }
 0x3dd   :  { %806 = shalt.err (!%p803_p6)
}
 0x3de   :  { %s807_s12 = scalar_lea.hbm %s978_s2, 64 }
 0x3df   :  { %p808_p7 = scmp.ne.s32.totalorder %s978_s2, %s807_s12  ;;  %p811_p8 = scmp.lt.u32.totalorder %s807_s12, %s978_s2 }
 0x3e1   :  { %p813_p9 = pnand %p811_p8, %p808_p7 }
 0x3e3   :  { %816 = shalt.err (!%p813_p9)
}
 0x3e4   :  { %609 = dma.vmem_to_hbm [thread:$0]  %s607_s8, 64, %s978_s2, [#allocation4]  }
 0x3e5   :  { %821 = dma.done.wait [#allocation4], 64  }
 0x3e6   :  { %822 = vsyncadd [#allocation4], 4294967232 }
 0x3e7   :  { %613 = vsyncpa [#allocation3], 1 }
 0x3e8   :  { %614 = vsyncpa [#allocation6], 1 }
 0x3e9   :  { %615 = vsyncpa [#allocation4], 1 }

</bundles_post_ra>
